<compile_context>
chip_gen: v5e
topology: v5e:2x2
jax: 0.10.0
libtpu: 0.0.40
codegen_flags: <defaults>
</compile_context>

<pallas_src>
import math

import jax
import jax.numpy as jnp
import numpy as np
from jax.experimental import pallas as pl
from jax.experimental.pallas import tpu as pltpu


def _cdiv(a, b):
    return -(-a // b)


def _gelu_tanh(x):
    # GELU with tanh approximation (matches nn.GELU(approximate='tanh')).
    c = math.sqrt(2.0 / math.pi)
    return 0.5 * x * (1.0 + jnp.tanh(c * (x + 0.044715 * x * x * x)))


def _caption_embedder_kernel(cap_ref,          # (rows, C)    compute dtype, streamed
                             mask_ref,         # (R_all, 1)   f32, resident
                             yrep_ref,         # (rows, C)    compute dtype, resident
                             w1_ref, b1_ref,   # (C, Hp) cd,  (1, Hp) f32, resident
                             w2_ref, b2_ref,   # (Hp, Hp) cd, (1, Hp) f32, resident
                             out_ref):         # (rows, Hp)   out dtype, streamed
    rows = cap_ref.shape[0]
    i = pl.program_id(0)
    start = pl.multiple_of(i * rows, 8)
    drop = mask_ref[pl.ds(start, rows), :] > 0.5                 # (rows, 1) bool
    x = jnp.where(drop, yrep_ref[...], cap_ref[...])             # token_drop
    h = jnp.dot(x, w1_ref[...], preferred_element_type=jnp.float32) + b1_ref[...]
    h = _gelu_tanh(h)
    o = jnp.dot(h.astype(w2_ref.dtype), w2_ref[...],
                preferred_element_type=jnp.float32) + b2_ref[...]
    out_ref[...] = o.astype(out_ref.dtype)


def _vmem_budget_bytes():
    try:
        cap = int(pltpu.get_tpu_info().vmem_capacity_bytes)
    except Exception:
        cap = 64 * 1024 * 1024        # conservative fallback (v7x per-TC VMEM)
    return int(cap * 0.85)


def caption_embedder_forward(caption, drop_ids, params, *,
                             target_rows=512,
                             compute_dtype=jnp.bfloat16,
                             out_dtype=None):
    """caption: (B, T, C); drop_ids: (B,) int (nonzero = replace with y_embedding)."""
    B, T, C = caption.shape
    H = params["w1"].shape[1]
    if out_dtype is None:
        out_dtype = compute_dtype
    wsize = jnp.dtype(compute_dtype).itemsize
    osize = jnp.dtype(out_dtype).itemsize

    # ---- lane-dense hidden dim (tiny weight pads; no output slice if H % 128 == 0) ----
    Hp = _cdiv(H, 128) * 128
    w1, b1, w2, b2 = params["w1"], params["b1"], params["w2"], params["b2"]
    if Hp != H:
        w1 = jnp.pad(w1, ((0, 0), (0, Hp - H)))
        b1 = jnp.pad(b1, ((0, Hp - H),))
        w2 = jnp.pad(w2, ((0, Hp - H), (0, Hp - H)))
        b2 = jnp.pad(b2, ((0, Hp - H),))
    w1 = w1.astype(compute_dtype)
    w2 = w2.astype(compute_dtype)
    b1 = b1.reshape(1, Hp).astype(jnp.float32)
    b2 = b2.reshape(1, Hp).astype(jnp.float32)

    # ---- 2-D activations, bf16 streamed (contiguous reshape is free) ----
    cap2 = caption.reshape(B * T, C).astype(compute_dtype)
    y_emb = params["y_embedding"].astype(compute_dtype)

    # ---- tile_b selection: rows per step must be a multiple of 8 unless one block ----
    step = 8 // math.gcd(T, 8)
    tile_b = max(step, (max(1, target_rows // max(T, 1)) // step) * step)
    if tile_b >= B:
        tile_b = B                                          # one block == full array
    if B > step:
        # keep >=2 grid steps so dual-TensorCore chips (v7x) shard the batch
        tile_b = min(tile_b, ((B - 1) // step) * step)

    budget = _vmem_budget_bytes()

    def est_bytes(tb):
        rows = tb * T
        invariants = ((C * Hp + Hp * Hp) * wsize            # w1, w2 (single-buffered)
                      + 2 * Hp * 4                          # b1, b2
                      + rows * C * wsize                    # batch-tiled y_embedding
                      + (B * T + rows) * 4)                 # drop mask (padded)
        streamed = 2 * rows * C * wsize + 2 * rows * Hp * osize
        interm = 3 * rows * Hp * 4 + 2 * rows * C * wsize   # f32 h/o + where headroom
        return invariants + streamed + interm

    while est_bytes(tile_b) > budget and tile_b > step:
        tile_b = max(step, ((tile_b - 1) // step) * step)
    if est_bytes(tile_b) > budget:
        # TODO(synk): tile Hp (or split fc1/fc2 into two pallas_calls) when the
        # MLP weights alone do not fit the per-core VMEM budget.
        raise ValueError(
            f"CaptionEmbedder tiles (~{est_bytes(tile_b)} B) exceed the VMEM "
            f"budget ({budget} B); hidden_size={H} needs an Hp-tiled kernel.")

    rows = tile_b * T
    n_blocks = _cdiv(B, tile_b)
    grid = (n_blocks,)
    n_rows_total = n_blocks * rows
    vmem_limit = min(budget, max(32 * 1024 * 1024, int(1.5 * est_bytes(tile_b))))

    # ---- grid-invariant operands (tiny host-side prep; no (B,T,C)-sized pads) ----
    y_rep = jnp.tile(y_emb, (tile_b, 1))                                # (rows, C)
    drop_rows = jnp.repeat((drop_ids != 0).astype(jnp.float32), T)      # (B*T,)
    if n_rows_total != B * T:
        drop_rows = jnp.pad(drop_rows, (0, n_rows_total - B * T))
    drop_rows = drop_rows.reshape(n_rows_total, 1)

    flops = 2 * B * T * (C * Hp + Hp * Hp)
    transcendentals = B * T * Hp
    bytes_accessed = (B * T * C * wsize + B * T * Hp * osize
                      + (C * Hp + Hp * Hp) * wsize + 2 * Hp * 4
                      + rows * C * wsize + n_rows_total * 4)
    cost = pl.CostEstimate(flops=int(flops), transcendentals=int(transcendentals),
                           bytes_accessed=int(bytes_accessed))

    def build(use_buffered):
        def inv(shape):
            if use_buffered:
                # Grid-invariant resident operand: single-buffer it.
                return pl.BlockSpec(shape, lambda i: (0, 0),
                                    pipeline_mode=pl.Buffered(1))
            return pl.BlockSpec(shape, lambda i: (0, 0))

        in_specs = [
            pl.BlockSpec((rows, C), lambda i: (i, 0)),   # caption block (streamed)
            inv((n_rows_total, 1)),                      # per-row drop mask
            inv((rows, C)),                              # batch-tiled y_embedding
            inv((C, Hp)),                                # w1
            inv((1, Hp)),                                # b1
            inv((Hp, Hp)),                               # w2
            inv((1, Hp)),                                # b2
        ]
        out_specs = pl.BlockSpec((rows, Hp), lambda i: (i, 0))
        return pl.pallas_call(
            _caption_embedder_kernel,
            out_shape=jax.ShapeDtypeStruct((B * T, Hp), out_dtype),
            grid=grid,
            in_specs=in_specs,
            out_specs=out_specs,
            compiler_params=pltpu.CompilerParams(
                dimension_semantics=("parallel",),
                vmem_limit_bytes=int(vmem_limit)),
            cost_estimate=cost,
        )

    args = (cap2, drop_rows, y_rep, w1, b1, w2, b2)
    if hasattr(pl, "Buffered"):
        try:
            out2 = build(True)(*args)
        except Exception:
            # pl.Buffered(1) rejected by this JAX build: retry with default
            # buffering.  Any genuine error reproduces here and propagates.
            out2 = build(False)(*args)
    else:
        out2 = build(False)(*args)

    out = out2.reshape(B, T, Hp)
    if Hp != H:
        out = out[:, :, :H]
    return out


def caption_embedder_reference(caption, drop_ids, params):
    """Pure-JAX f32 reference mirroring the PyTorch forward (train + force_drop_ids)."""
    x = jnp.where(drop_ids[:, None, None] != 0, params["y_embedding"][None], caption)
    h = _gelu_tanh(x @ params["w1"] + params["b1"])
    return h @ params["w2"] + params["b2"]


def init_params(key, in_channels, hidden_size, token_num):
    k0, k1, k2, k3, k4 = jax.random.split(key, 5)
    return {
        # register_buffer: randn(token_num, in_channels) / sqrt(in_channels)
        "y_embedding": jax.random.normal(k0, (token_num, in_channels), jnp.float32)
        / math.sqrt(in_channels),
        "w1": jax.random.normal(k1, (in_channels, hidden_size), jnp.float32)
        * (1.0 / math.sqrt(in_channels)),
        "b1": jax.random.normal(k2, (hidden_size,), jnp.float32) * 0.01,
        "w2": jax.random.normal(k3, (hidden_size, hidden_size), jnp.float32)
        * (1.0 / math.sqrt(hidden_size)),
        "b2": jax.random.normal(k4, (hidden_size,), jnp.float32) * 0.01,
    }


if __name__ == "__main__":
    B, T, C, H = 2, 8, 16, 32          # batch, token_num, in_channels, hidden_size
    key = jax.random.PRNGKey(0)
    kp, kc = jax.random.split(key)

    params = init_params(kp, in_channels=C, hidden_size=H, token_num=T)
    caption = jax.random.normal(kc, (B, T, C), jnp.float32)
    # train=True path with force_drop_ids (deterministic CFG drop): drop batch 1.
    # TODO(synk): stochastic drop (torch.rand < uncond_prob) is left to the caller,
    # which passes the sampled drop_ids in.
    force_drop_ids = jnp.array([0, 1], dtype=jnp.int32)

    out = caption_embedder_forward(caption, force_drop_ids, params)
    out = jax.block_until_ready(out)

    ref = caption_embedder_reference(caption, force_drop_ids, params)
    # bf16 activations/weights/output with f32 MXU accumulation => ~1e-2 agreement.
    np.testing.assert_allclose(np.asarray(out.astype(jnp.float32)),
                               np.asarray(ref),
                               rtol=3e-2, atol=3e-2)

    print("KERNEL_OK")
</pallas_src>

<mosaic_0001>
module attributes {stable_mosaic.version = 11 : i64} {
  func.func @_caption_embedder_kernel(%arg0: i32, %arg1: memref<8x16xbf16, #tpu.memory_space<vmem>>, %arg2: memref<16x1xf32, #tpu.memory_space<vmem>>, %arg3: memref<8x16xbf16, #tpu.memory_space<vmem>>, %arg4: memref<16x128xbf16, #tpu.memory_space<vmem>>, %arg5: memref<1x128xf32, #tpu.memory_space<vmem>>, %arg6: memref<128x128xbf16, #tpu.memory_space<vmem>>, %arg7: memref<1x128xf32, #tpu.memory_space<vmem>>, %arg8: memref<8x128xbf16, #tpu.memory_space<vmem>>) attributes {dimension_semantics = [#tpu.dimension_semantics<parallel>], iteration_bounds = array<i64: 2>, scalar_prefetch = 0 : i64, scratch_operands = 0 : i64, tpu.core_type = #tpu.core_type<tc>, window_params = [{transform_indices = @transform_0, window_bounds = array<i64: 8, 16>}, {pipeline_mode = #tpu.pipeline_mode<synchronous>, transform_indices = @transform_1, window_bounds = array<i64: 16, 1>}, {pipeline_mode = #tpu.pipeline_mode<synchronous>, transform_indices = @transform_2, window_bounds = array<i64: 8, 16>}, {pipeline_mode = #tpu.pipeline_mode<synchronous>, transform_indices = @transform_3, window_bounds = array<i64: 16, 128>}, {pipeline_mode = #tpu.pipeline_mode<synchronous>, transform_indices = @transform_4, window_bounds = array<i64: 1, 128>}, {pipeline_mode = #tpu.pipeline_mode<synchronous>, transform_indices = @transform_5, window_bounds = array<i64: 128, 128>}, {pipeline_mode = #tpu.pipeline_mode<synchronous>, transform_indices = @transform_6, window_bounds = array<i64: 1, 128>}, {transform_indices = @transform_7, window_bounds = array<i64: 8, 128>}]} {
    %c8_i32 = arith.constant 8 : i32
    %0 = arith.muli %arg0, %c8_i32 : i32
    %1 = tpu.assume_multiple %0, 8 : i32
    %2 = arith.index_cast %1 : i32 to index
    %c0 = arith.constant 0 : index
    %3 = vector.load %arg2[%2, %c0] : memref<16x1xf32, #tpu.memory_space<vmem>>, vector<8x1xf32>
    %cst = arith.constant 5.000000e-01 : f32
    %4 = vector.broadcast %cst : f32 to vector<8x1xf32>
    %5 = arith.cmpf ogt, %3, %4 : vector<8x1xf32>
    %c0_0 = arith.constant 0 : index
    %c0_1 = arith.constant 0 : index
    %6 = vector.load %arg3[%c0_0, %c0_1] : memref<8x16xbf16, #tpu.memory_space<vmem>>, vector<8x16xbf16>
    %c0_2 = arith.constant 0 : index
    %c0_3 = arith.constant 0 : index
    %7 = vector.load %arg1[%c0_2, %c0_3] : memref<8x16xbf16, #tpu.memory_space<vmem>>, vector<8x16xbf16>
    %8 = vector.shape_cast %5 : vector<8x1xi1> to vector<8x1xi1>
    %9 = vector.broadcast %8 : vector<8x1xi1> to vector<8x16xi1>
    %10 = arith.select %9, %6, %7 : vector<8x16xi1>, vector<8x16xbf16>
    %c0_4 = arith.constant 0 : index
    %c0_5 = arith.constant 0 : index
    %11 = vector.load %arg4[%c0_4, %c0_5] : memref<16x128xbf16, #tpu.memory_space<vmem>>, vector<16x128xbf16>
    %cst_6 = arith.constant dense<0.000000e+00> : vector<8x128xf32>
    %12 = tpu.matmul %10, %11, %cst_6 {dimension_numbers = #tpu.dot_dimension_numbers<[1], [0], [0], [1], [0, 0, 1, 1], [], []>} : vector<8x16xbf16>, vector<16x128xbf16>, vector<8x128xf32> -> vector<8x128xf32>
    %c0_7 = arith.constant 0 : index
    %c0_8 = arith.constant 0 : index
    %13 = vector.load %arg5[%c0_7, %c0_8] : memref<1x128xf32, #tpu.memory_space<vmem>>, vector<1x128xf32>
    %14 = vector.broadcast %13 : vector<1x128xf32> to vector<8x128xf32>
    %15 = arith.addf %12, %14 : vector<8x128xf32>
    %cst_9 = arith.constant 5.000000e-01 : f32
    %16 = vector.broadcast %cst_9 : f32 to vector<8x128xf32>
    %17 = arith.mulf %16, %15 : vector<8x128xf32>
    %cst_10 = arith.constant 4.471500e-02 : f32
    %18 = vector.broadcast %cst_10 : f32 to vector<8x128xf32>
    %19 = arith.mulf %18, %15 : vector<8x128xf32>
    %20 = arith.mulf %19, %15 : vector<8x128xf32>
    %21 = arith.mulf %20, %15 : vector<8x128xf32>
    %22 = arith.addf %15, %21 : vector<8x128xf32>
    %cst_11 = arith.constant 0.797884583 : f32
    %23 = vector.broadcast %cst_11 : f32 to vector<8x128xf32>
    %24 = arith.mulf %23, %22 : vector<8x128xf32>
    %25 = math.tanh %24 : vector<8x128xf32>
    %cst_12 = arith.constant 1.000000e+00 : f32
    %26 = vector.broadcast %cst_12 : f32 to vector<8x128xf32>
    %27 = arith.addf %26, %25 : vector<8x128xf32>
    %28 = arith.mulf %17, %27 : vector<8x128xf32>
    %29 = arith.truncf %28 : vector<8x128xf32> to vector<8x128xbf16>
    %c0_13 = arith.constant 0 : index
    %c0_14 = arith.constant 0 : index
    %30 = vector.load %arg6[%c0_13, %c0_14] : memref<128x128xbf16, #tpu.memory_space<vmem>>, vector<128x128xbf16>
    %cst_15 = arith.constant dense<0.000000e+00> : vector<8x128xf32>
    %31 = tpu.matmul %29, %30, %cst_15 {dimension_numbers = #tpu.dot_dimension_numbers<[1], [0], [0], [1], [0, 0, 1, 1], [], []>} : vector<8x128xbf16>, vector<128x128xbf16>, vector<8x128xf32> -> vector<8x128xf32>
    %c0_16 = arith.constant 0 : index
    %c0_17 = arith.constant 0 : index
    %32 = vector.load %arg7[%c0_16, %c0_17] : memref<1x128xf32, #tpu.memory_space<vmem>>, vector<1x128xf32>
    %33 = vector.broadcast %32 : vector<1x128xf32> to vector<8x128xf32>
    %34 = arith.addf %31, %33 : vector<8x128xf32>
    %35 = arith.truncf %34 : vector<8x128xf32> to vector<8x128xbf16>
    %c0_18 = arith.constant 0 : index
    %c0_19 = arith.constant 0 : index
    %36 = vector.load %arg8[%c0_18, %c0_19] : memref<8x128xbf16, #tpu.memory_space<vmem>>, vector<8x128xbf16>
    tpu.vector_store %arg8[%c0_18, %c0_19], %35 {strides = array<i32>} : memref<8x128xbf16, #tpu.memory_space<vmem>>, vector<8x128xbf16>,
    return
  }
  func.func @transform_0(%arg0: i32) -> (i32, i32) {
    %c0_i32 = arith.constant 0 : i32
    %c0_i32_0 = arith.constant 0 : i32
    return %arg0, %c0_i32 : i32, i32
  }
  func.func @transform_1(%arg0: i32) -> (i32, i32) {
    %c0_i32 = arith.constant 0 : i32
    %c0_i32_0 = arith.constant 0 : i32
    %c0_i32_1 = arith.constant 0 : i32
    return %c0_i32, %c0_i32_0 : i32, i32
  }
  func.func @transform_2(%arg0: i32) -> (i32, i32) {
    %c0_i32 = arith.constant 0 : i32
    %c0_i32_0 = arith.constant 0 : i32
    %c0_i32_1 = arith.constant 0 : i32
    return %c0_i32, %c0_i32_0 : i32, i32
  }
  func.func @transform_3(%arg0: i32) -> (i32, i32) {
    %c0_i32 = arith.constant 0 : i32
    %c0_i32_0 = arith.constant 0 : i32
    %c0_i32_1 = arith.constant 0 : i32
    return %c0_i32, %c0_i32_0 : i32, i32
  }
  func.func @transform_4(%arg0: i32) -> (i32, i32) {
    %c0_i32 = arith.constant 0 : i32
    %c0_i32_0 = arith.constant 0 : i32
    %c0_i32_1 = arith.constant 0 : i32
    return %c0_i32, %c0_i32_0 : i32, i32
  }
  func.func @transform_5(%arg0: i32) -> (i32, i32) {
    %c0_i32 = arith.constant 0 : i32
    %c0_i32_0 = arith.constant 0 : i32
    %c0_i32_1 = arith.constant 0 : i32
    return %c0_i32, %c0_i32_0 : i32, i32
  }
  func.func @transform_6(%arg0: i32) -> (i32, i32) {
    %c0_i32 = arith.constant 0 : i32
    %c0_i32_0 = arith.constant 0 : i32
    %c0_i32_1 = arith.constant 0 : i32
    return %c0_i32, %c0_i32_0 : i32, i32
  }
  func.func @transform_7(%arg0: i32) -> (i32, i32) {
    %c0_i32 = arith.constant 0 : i32
    %c0_i32_0 = arith.constant 0 : i32
    return %arg0, %c0_i32 : i32, i32
  }
}

module attributes {stable_mosaic.version = 11 : i64} {
  func.func @_caption_embedder_kernel(%arg0: i32, %arg1: memref<8x16xbf16, #tpu.memory_space<vmem>>, %arg2: memref<16x1xf32, #tpu.memory_space<vmem>>, %arg3: memref<8x16xbf16, #tpu.memory_space<vmem>>, %arg4: memref<16x128xbf16, #tpu.memory_space<vmem>>, %arg5: memref<1x128xf32, #tpu.memory_space<vmem>>, %arg6: memref<128x128xbf16, #tpu.memory_space<vmem>>, %arg7: memref<1x128xf32, #tpu.memory_space<vmem>>, %arg8: memref<8x128xbf16, #tpu.memory_space<vmem>>) attributes {dimension_semantics = [#tpu.dimension_semantics<parallel>], iteration_bounds = array<i64: 2>, scalar_prefetch = 0 : i64, scratch_operands = 0 : i64, tpu.core_type = #tpu.core_type<tc>, window_params = [{transform_indices = @transform_0, window_bounds = array<i64: 8, 16>}, {pipeline_mode = #tpu.pipeline_mode<synchronous>, transform_indices = @transform_1, window_bounds = array<i64: 16, 1>}, {pipeline_mode = #tpu.pipeline_mode<synchronous>, transform_indices = @transform_2, window_bounds = array<i64: 8, 16>}, {pipeline_mode = #tpu.pipeline_mode<synchronous>, transform_indices = @transform_3, window_bounds = array<i64: 16, 128>}, {pipeline_mode = #tpu.pipeline_mode<synchronous>, transform_indices = @transform_4, window_bounds = array<i64: 1, 128>}, {pipeline_mode = #tpu.pipeline_mode<synchronous>, transform_indices = @transform_5, window_bounds = array<i64: 128, 128>}, {pipeline_mode = #tpu.pipeline_mode<synchronous>, transform_indices = @transform_6, window_bounds = array<i64: 1, 128>}, {transform_indices = @transform_7, window_bounds = array<i64: 8, 128>}]} {
    %c8_i32 = arith.constant 8 : i32
    %0 = arith.muli %arg0, %c8_i32 : i32
    %1 = tpu.assume_multiple %0, 8 : i32
    %2 = arith.index_cast %1 : i32 to index
    %c0 = arith.constant 0 : index
    %3 = vector.load %arg2[%2, %c0] : memref<16x1xf32, #tpu.memory_space<vmem>>, vector<8x1xf32>
    %cst = arith.constant 5.000000e-01 : f32
    %4 = vector.broadcast %cst : f32 to vector<8x1xf32>
    %5 = arith.cmpf ogt, %3, %4 : vector<8x1xf32>
    %c0_0 = arith.constant 0 : index
    %c0_1 = arith.constant 0 : index
    %6 = vector.load %arg3[%c0_0, %c0_1] : memref<8x16xbf16, #tpu.memory_space<vmem>>, vector<8x16xbf16>
    %c0_2 = arith.constant 0 : index
    %c0_3 = arith.constant 0 : index
    %7 = vector.load %arg1[%c0_2, %c0_3] : memref<8x16xbf16, #tpu.memory_space<vmem>>, vector<8x16xbf16>
    %8 = vector.shape_cast %5 : vector<8x1xi1> to vector<8x1xi1>
    %9 = vector.broadcast %8 : vector<8x1xi1> to vector<8x16xi1>
    %10 = arith.select %9, %6, %7 : vector<8x16xi1>, vector<8x16xbf16>
    %c0_4 = arith.constant 0 : index
    %c0_5 = arith.constant 0 : index
    %11 = vector.load %arg4[%c0_4, %c0_5] : memref<16x128xbf16, #tpu.memory_space<vmem>>, vector<16x128xbf16>
    %cst_6 = arith.constant dense<0.000000e+00> : vector<8x128xf32>
    %12 = tpu.matmul %10, %11, %cst_6 {dimension_numbers = #tpu.dot_dimension_numbers<[1], [0], [0], [1], [0, 0, 1, 1], [], []>} : vector<8x16xbf16>, vector<16x128xbf16>, vector<8x128xf32> -> vector<8x128xf32>
    %c0_7 = arith.constant 0 : index
    %c0_8 = arith.constant 0 : index
    %13 = vector.load %arg5[%c0_7, %c0_8] : memref<1x128xf32, #tpu.memory_space<vmem>>, vector<1x128xf32>
    %14 = vector.broadcast %13 : vector<1x128xf32> to vector<8x128xf32>
    %15 = arith.addf %12, %14 : vector<8x128xf32>
    %cst_9 = arith.constant 5.000000e-01 : f32
    %16 = vector.broadcast %cst_9 : f32 to vector<8x128xf32>
    %17 = arith.mulf %16, %15 : vector<8x128xf32>
    %cst_10 = arith.constant 4.471500e-02 : f32
    %18 = vector.broadcast %cst_10 : f32 to vector<8x128xf32>
    %19 = arith.mulf %18, %15 : vector<8x128xf32>
    %20 = arith.mulf %19, %15 : vector<8x128xf32>
    %21 = arith.mulf %20, %15 : vector<8x128xf32>
    %22 = arith.addf %15, %21 : vector<8x128xf32>
    %cst_11 = arith.constant 0.797884583 : f32
    %23 = vector.broadcast %cst_11 : f32 to vector<8x128xf32>
    %24 = arith.mulf %23, %22 : vector<8x128xf32>
    %25 = math.tanh %24 : vector<8x128xf32>
    %cst_12 = arith.constant 1.000000e+00 : f32
    %26 = vector.broadcast %cst_12 : f32 to vector<8x128xf32>
    %27 = arith.addf %26, %25 : vector<8x128xf32>
    %28 = arith.mulf %17, %27 : vector<8x128xf32>
    %29 = arith.truncf %28 : vector<8x128xf32> to vector<8x128xbf16>
    %c0_13 = arith.constant 0 : index
    %c0_14 = arith.constant 0 : index
    %30 = vector.load %arg6[%c0_13, %c0_14] : memref<128x128xbf16, #tpu.memory_space<vmem>>, vector<128x128xbf16>
    %cst_15 = arith.constant dense<0.000000e+00> : vector<8x128xf32>
    %31 = tpu.matmul %29, %30, %cst_15 {dimension_numbers = #tpu.dot_dimension_numbers<[1], [0], [0], [1], [0, 0, 1, 1], [], []>} : vector<8x128xbf16>, vector<128x128xbf16>, vector<8x128xf32> -> vector<8x128xf32>
    %c0_16 = arith.constant 0 : index
    %c0_17 = arith.constant 0 : index
    %32 = vector.load %arg7[%c0_16, %c0_17] : memref<1x128xf32, #tpu.memory_space<vmem>>, vector<1x128xf32>
    %33 = vector.broadcast %32 : vector<1x128xf32> to vector<8x128xf32>
    %34 = arith.addf %31, %33 : vector<8x128xf32>
    %35 = arith.truncf %34 : vector<8x128xf32> to vector<8x128xbf16>
    %c0_18 = arith.constant 0 : index
    %c0_19 = arith.constant 0 : index
    %36 = vector.load %arg8[%c0_18, %c0_19] : memref<8x128xbf16, #tpu.memory_space<vmem>>, vector<8x128xbf16>
    tpu.vector_store %arg8[%c0_18, %c0_19], %35 {strides = array<i32>} : memref<8x128xbf16, #tpu.memory_space<vmem>>, vector<8x128xbf16>,
    return
  }
  func.func @transform_0(%arg0: i32) -> (i32, i32) {
    %c0_i32 = arith.constant 0 : i32
    %c0_i32_0 = arith.constant 0 : i32
    return %arg0, %c0_i32 : i32, i32
  }
  func.func @transform_1(%arg0: i32) -> (i32, i32) {
    %c0_i32 = arith.constant 0 : i32
    %c0_i32_0 = arith.constant 0 : i32
    %c0_i32_1 = arith.constant 0 : i32
    return %c0_i32, %c0_i32_0 : i32, i32
  }
  func.func @transform_2(%arg0: i32) -> (i32, i32) {
    %c0_i32 = arith.constant 0 : i32
    %c0_i32_0 = arith.constant 0 : i32
    %c0_i32_1 = arith.constant 0 : i32
    return %c0_i32, %c0_i32_0 : i32, i32
  }
  func.func @transform_3(%arg0: i32) -> (i32, i32) {
    %c0_i32 = arith.constant 0 : i32
    %c0_i32_0 = arith.constant 0 : i32
    %c0_i32_1 = arith.constant 0 : i32
    return %c0_i32, %c0_i32_0 : i32, i32
  }
  func.func @transform_4(%arg0: i32) -> (i32, i32) {
    %c0_i32 = arith.constant 0 : i32
    %c0_i32_0 = arith.constant 0 : i32
    %c0_i32_1 = arith.constant 0 : i32
    return %c0_i32, %c0_i32_0 : i32, i32
  }
  func.func @transform_5(%arg0: i32) -> (i32, i32) {
    %c0_i32 = arith.constant 0 : i32
    %c0_i32_0 = arith.constant 0 : i32
    %c0_i32_1 = arith.constant 0 : i32
    return %c0_i32, %c0_i32_0 : i32, i32
  }
  func.func @transform_6(%arg0: i32) -> (i32, i32) {
    %c0_i32 = arith.constant 0 : i32
    %c0_i32_0 = arith.constant 0 : i32
    %c0_i32_1 = arith.constant 0 : i32
    return %c0_i32, %c0_i32_0 : i32, i32
  }
  func.func @transform_7(%arg0: i32) -> (i32, i32) {
    %c0_i32 = arith.constant 0 : i32
    %c0_i32_0 = arith.constant 0 : i32
    return %arg0, %c0_i32 : i32, i32
  }
}

</mosaic_0001>

<bundles_post_ra>
// kernel: tpu_custom_call.1
= control target key start
LH: loop header
LB: loop body
LE: loop exit
PB: predicated region body
PF: predicated region fallthrough
CT: control target
= control target key end

     0   :  { %12 = vsyncpa [#allocation3], 0  ;;  %s970_s0 = inlined_call_operand.vmem [shape: bf16[16,16], index: 0, kind: input, shape index: {}]   ;;  %s971_s1 = inlined_call_operand.vmem [shape: f32[16,1], index: 1, kind: input, shape index: {}]   ;;  %s972_s2 = inlined_call_operand.hbm [shape: bf16[8,16], index: 2, kind: input, shape index: {}]   ;;  %s973_s3 = inlined_call_operand.vmem [shape: bf16[16,128], index: 3, kind: input, shape index: {}]   ;;  %s974_s4 = inlined_call_operand.vmem [shape: f32[1,128], index: 4, kind: input, shape index: {}]   ;;  %s975_s5 = inlined_call_operand.hbm [shape: bf16[128,128], index: 5, kind: input, shape index: {}]   ;;  %s976_s6 = inlined_call_operand.vmem [shape: f32[1,128], index: 6, kind: input, shape index: {}]   ;;  %s977_s7 = inlined_call_operand.hbm [shape: bf16[16,128], index: 7, kind: output, shape index: {}]  }
   0x1   :  { %13 = vsyncpa [#allocation6], 0 }
   0x2   :  { %14 = vsyncpa [#allocation4], 0 }
   0x3   :  { %16 = vsyncpa [#allocation4 + $0x1], 0  ;;  %s847_s24 = smov 0   ;;  %s849_s25 = smov 0  }
   0x4   :  { %s851_s26 = smov 0   ;;  %s853_s27 = smov 0  }
   0x5 LB: > { %s868_s28 = sadd.s32 4294967295, %s800_s27   ;;  %s541_s29 = sadd.s32 4294967294, %s800_s27   ;;  %s800_s27 = sphi %s853_s27, %s984_s27   ;;  %s796_s26 = sphi %s851_s26, %s983_s26   ;;  %s792_s25 = sphi %s849_s25, %s982_s25   ;;  %s788_s24 = sphi %s847_s24, %s981_s24  }
   0x6   : > { %s872_s30 = sadd.s32 1, %s800_s27   ;;  %s181_s8 = sadd.s32 1, %s796_s26 }
   0x7   : > { %s178_s9 = ssub.s32 %s800_s27, %s872_s30  ;;  %p191_p0 = scmp.ne.s32.totalorder %s796_s26, %s792_s25 }
   0x8   : > { %p179_p1 = scmp.eq.s32.totalorder %s178_s9, 0  ;;  %p192_p2 = scmp.eq.s32.totalorder %s868_s28, 1 }
   0x9   : > { %p197_p3 = scmp.ne.s32.totalorder %s792_s25, %s788_s24  ;;  %p198_p4 = scmp.eq.s32.totalorder %s541_s29, 1 }
   0xa   : > { %s883_s10 = scalar_select %p179_p1, %s796_s26, %s181_s8  }
   0xb   : > { %p885_p5 = por %p192_p2, %p191_p0  ;;  %p889_p6 = por %p198_p4, %p197_p3 }
   0xc   : > { %p542_p7 = scmp.ge.s32.totalorder %s800_s27, 1  ;;  %p205_p8 = scmp.lt.s32.totalorder %s800_s27, 3 }
   0xd   : > { %p623_p9 = scmp.eq.s32.totalorder %s868_s28, 0  ;;  %s220_s16 = sshll.u32 %s972_s2, 4  ;;  %s221_s16 = int_to_ptr.hbm [resolvable:$true] %s220_s16 }
   0xe   : > { %p896_p10 = pnand %p542_p7, %p205_p8  ;;  %s802_s17 = smov [#allocation2]  }
   0xf   : > { %s222_s18 = sshll.u32 %s802_s17, 4  ;;  %s237_s21 = sshll.u32 %s975_s5, 4  ;;  %s223_s18 = int_to_ptr.vmem [resolvable:$true] %s222_s18  ;;  %s238_s21 = int_to_ptr.hbm [resolvable:$true] %s237_s21 }
  0x10   : > { %p612_p11 = pneg %p896_p10  ;;  %s803_s22 = smov [#allocation5]  }
  0x11   : > { %s239_s23 = sshll.u32 %s803_s22, 4  ;;  %s804_s29 = smov 64   ;;  %s240_s23 = int_to_ptr.vmem [resolvable:$true] %s239_s23 }
  0x12   : > { %p613_p12 = pnand %p623_p9, %p612_p11  ;;  %s805_s8 = smov 4  }
  0x13   : > { %265 = sbr.rel (%p896_p10) target bundleno = 435 (0x1b3), region = 48 }
  0x14   : > { %615 = dma.hbm_to_vmem [thread:$0]  (!%p613_p12), %s221_s16, 64, %s223_s18, [#allocation3]  }
  0x15   : > { %618 = dma.hbm_to_vmem [thread:$0]  (!%p613_p12), %s238_s21, 1024, %s240_s23, [#allocation6], %s804_s29, %s804_s29, %s805_s8  }
  0x18   : > { %775 = dma.done.wait (%p623_p9), [#allocation3], 64  }
  0x19   : > { %777 = vsyncadd (%p623_p9), [#allocation3], 4294967232 }
  0x1a   : > { %779 = dma.done.wait (%p623_p9), [#allocation6], 1024  }
  0x1b   : > { %781 = vsyncadd (%p623_p9), [#allocation6], 4294966272  ;;  %v806_v0 = vmov 0   ;;  %s551_s9 = sshll.u32 %s868_s28, 3  ;;  %v593_v3 = vld [vmem:[%s973_s3] sm:$0xff]  ;;  %v600_v5 = vld [vmem:[#allocation5 + $0x30] sm:$0xff] }
  0x1c   : > { %665 = vset.pattern.permute.xlu0 %v806_v0  ;;  %s308_s15 = scalar_lea.vmem %s971_s1, %s551_s9  ;;  %343 = vmatpush.bf16.msra.mxu0 %v593_v3  ;;  %v601_v4 = vld [vmem:[#allocation5 + $0x38] sm:$0xff]  ;;  %p302_p13 = scmp.lt.s32.totalorder %s868_s28, 1  ;;  %vm332_vm2 = vcmask 130048   ;;  %v599_v10 = vld [vmem:[#allocation5 + $0x28] sm:$0xff]  ;;  %v598_v11 = vld [vmem:[#allocation5 + $0x20] sm:$0xff] }
  0x1d   : > { %v309_v1 = vld [vmem:[%s308_s15] sm:$0xff]  ;;  %427 = vmatpush.bf16.msra.mxu1 %v601_v4  ;;  %v596_v13 = vld [vmem:[#allocation5 + $0x10] sm:$0xff]  ;;  %v595_v14 = vld [vmem:[#allocation5 + $0x8] sm:$0xff]  ;;  %s299_s8 = sand.u32 1, %s792_s25   ;;  %s590_s13 = sshll.u32 %s868_s28, 2 }
  0x1e   : > { %vm310_vm0 = vcmp.gt.f32.partialorder %v309_v1, 0.5  ;;  %s303_s18 = scalar_select %p302_p13, %s868_s28, 1  ;;  %v311_v7 = vld [vmem:[#allocation2] sm:$0xf]  ;;  %v594_v15 = vld [vmem:[#allocation5] sm:$0xff] }
  0x1f   : > { %v313_v2 = vsel %vm310_vm0, 1, %v806_v0  ;;  %v597_v12 = vld [vmem:[#allocation5 + $0x18] sm:$0xff]  ;;  %s549_s9 = sshll.u32 %s299_s8, 2 }
  0x20   : > { %315 = vperm.xlu0 %665, %v313_v2   ;;  %s550_s19 = sshll.u32 %s303_s18, 2  ;;  %v666_v16 = vld [vmem:[%s974_s4] ss:$0 sm:$0xff]  ;;  %s453_s18 = scalar_lea.hbm %s977_s7, %s590_s13 }
  0x21   : > { %428 = vmatpush.bf16.msra.mxu1 %v600_v5  ;;  %s305_s22 = scalar_lea.vmem %s970_s0, %s550_s19  ;;  %v667_v30 = vld [vmem:[%s976_s6] ss:$0 sm:$0xff]  ;;  %s301_s19 = scalar_lea.vmem [#allocation7], %s549_s9 }
  0x22   : > { %v312_v8 = vld [vmem:[%s305_s22] sm:$0xf]  ;;  %s455_s20 = sshll.u32 %s301_s19, 4  ;;  %s457_s21 = sshll.u32 %s453_s18, 4  ;;  %s456_s20 = int_to_ptr.vmem [resolvable:$true] %s455_s20  ;;  %s458_s21 = int_to_ptr.hbm [resolvable:$true] %s457_s21 }
  0x23   : > { %s443_s22 = scalar_lea.sflag [#allocation4], %s299_s8  ;;  %s744_s28 = sshra.s32 %s458_s21, 4  ;;  %s745_s28 = int_to_ptr.hbm [resolvable:$true] %s744_s28 }
  0x24   : > { %s746_s23 = scalar_lea.hbm %s745_s28, 4  ;;  %s750_s13 = scalar_lea.hbm %s977_s7, 8 }
  0x25   : > { %429 = vmatpush.bf16.msra.mxu1 %v599_v10  ;;  %p747_p0 = scmp.ne.s32.totalorder %s745_s28, %s746_s23  ;;  %p751_p3 = scmp.lt.s32.totalorder %s745_s28, %s977_s7 }
  0x26   : > { %p752_p4 = scmp.lt.s32.totalorder %s750_s13, %s746_s23 }
  0x27   : > { %p748_p1 = pnand %p747_p0, %p885_p5 }
  0x28   : > { %p753_p7 = por %p752_p4, %p751_p3 }
  0x29   : > { %430 = vmatpush.bf16.msra.mxu1 %v598_v11  ;;  %p749_p2 = pneg %p748_p1 }
  0x2b   : > { %p754_p8 = pnand %p753_p7, %p749_p2 }
  0x2d   : > { %431 = vmatpush.bf16.msra.mxu1 %v597_v12 }
  0x31   : > { %432 = vmatpush.bf16.msra.mxu1 %v596_v13 }
  0x35   : > { %433 = vmatpush.bf16.msra.mxu1 %v595_v14 }
  0x39   : > { %434 = vmatpush.bf16.msra.mxu1 %v594_v15 }
  0x92   : > { %v316_v6 = vpop.permute.xlu0 %315 }
  0x93   : > { %vm317_vm1 = vcmp.eq.s32.totalorder %v316_v6, 1 }
  0x94   : > { %vm318_vm3 = vmpackc.low %vm317_vm1, %vm317_vm1 }
  0x95   : > { %v319_v9 = vsel %vm318_vm3, %v311_v7, %v312_v8 }
  0x96   : > { %556 = vmatmul.msk.bf16.vlgmr.msra.gmra.mxu0 %vm332_vm2, %v319_v9 }
 0x113   : > { %v345_v17 = vpop.f32.mrf.mxu0 }
 0x114   : > { %v346_v18 = vadd.f32 %v666_v16, %v345_v17 }
 0x116   : > { %v350_v19 = vmul.f32 0.044715, %v346_v18  ;;  %v349_v26 = vmul.f32 0.5, %v346_v18 }
 0x118   : > { %v351_v20 = vmul.f32 %v350_v19, %v346_v18 }
 0x11a   : > { %v352_v21 = vmul.f32 %v351_v20, %v346_v18 }
 0x11b   : > { %v347_v22 = vpop.f32.mrf.mxu0 }
 0x11c   : > { %v353_v23 = vadd.f32 %v352_v21, %v346_v18 }
 0x11e   : > { %v354_v24 = vmul.f32 0.7978846, %v353_v23 }
 0x120   : > { %668 = vtanh.f32 %v354_v24 }
 0x126   : > { %v669_v25 = vpop.eup %668 }
 0x127   : > { %v356_v27 = vadd.f32 1.0, %v669_v25 }
 0x129   : > { %v357_v28 = vmul.f32 %v356_v27, %v349_v26 }
 0x12b   : > { %v358_v29 = vpack.c.bf16 %v357_v28, %v357_v28 }
 0x12d   : > { %435 = vmatmul.bf16.vlgmr.msra.gmra.mxu1 %v358_v29 }
 0x1aa   : > { %v436_v31 = vpop.f32.mrf.mxu1 }
 0x1ab   : > { %v437_v32 = vadd.f32 %v667_v30, %v436_v31 }
 0x1ad   : > { %v440_v33 = vpack.c.bf16 %v437_v32, %v437_v32 }
 0x1af   : > { %441 = vst [vmem:[%s301_s19] sm:$0xf] %v440_v33 }
 0x1b0   : > { %757 = shalt.err (!%p754_p8)
}
 0x1b1   : > { %610 = dma.vmem_to_hbm [thread:$0]  (%p885_p5), %s456_s20, 64, %s458_s21, %s443_s22  }
 0x1b2   : > { %v438_v34 = vpop.f32.mrf.mxu1 }
 0x1b3 PF: > { %p627_p9 = scmp.ge.s32.totalorder %s800_s27, 2  ;;  %s469_s8 = sand.u32 1, %s788_s24  }
 0x1b4   : > { %s470_s16 = scalar_lea.sflag [#allocation4], %s469_s8 }
 0x1b5   : > { %p620_p10 = pnand %p627_p9, %p889_p6 }
 0x1b7   : > { %p621_p11 = pneg %p620_p10 }
 0x1b9   : > { %783 = dma.done.wait (%p621_p11), %s470_s16, 64  }
 0x1ba   : > { %785 = vsyncadd (%p621_p11), %s470_s16, 4294967232  ;;  %p19_p12 = scmp.ge.s32.totalorder %s872_s30, 4   ;;  %s981_s24 = smov %s792_s25 }
 0x1bb   : > { %s982_s25 = smov %s796_s26  ;;  %s983_s26 = smov %s883_s10 }
 0x1bc   : > { %s984_s27 = smov %s872_s30  ;;  %21 = sbr.rel (!%p19_p12) target bundleno = 5 (0x5), region = 93 }
 0x1c1   :  { %476 = vsyncpa [#allocation3], 1 }
 0x1c2   :  { %478 = vsyncpa [#allocation3 + $0x1], 1 }
 0x1c3   :  { %479 = vsyncpa [#allocation6], 1 }
 0x1c4   :  { %480 = vsyncpa [#allocation4], 1 }
 0x1c5   :  { %482 = vsyncpa [#allocation4 + $0x1], 1 }

// kernel: tpu_custom_call.1
= control target key start
LH: loop header
LB: loop body
LE: loop exit
PB: predicated region body
PF: predicated region fallthrough
CT: control target
= control target key end

     0   :  { %12 = vsyncpa [#allocation3], 0  ;;  %s970_s0 = inlined_call_operand.vmem [shape: bf16[16,16], index: 0, kind: input, shape index: {}]   ;;  %s971_s1 = inlined_call_operand.vmem [shape: f32[16,1], index: 1, kind: input, shape index: {}]   ;;  %s972_s2 = inlined_call_operand.hbm [shape: bf16[8,16], index: 2, kind: input, shape index: {}]   ;;  %s973_s3 = inlined_call_operand.vmem [shape: bf16[16,128], index: 3, kind: input, shape index: {}]   ;;  %s974_s4 = inlined_call_operand.vmem [shape: f32[1,128], index: 4, kind: input, shape index: {}]   ;;  %s975_s5 = inlined_call_operand.hbm [shape: bf16[128,128], index: 5, kind: input, shape index: {}]   ;;  %s976_s6 = inlined_call_operand.vmem [shape: f32[1,128], index: 6, kind: input, shape index: {}]   ;;  %s977_s7 = inlined_call_operand.hbm [shape: bf16[16,128], index: 7, kind: output, shape index: {}]  }
   0x1   :  { %13 = vsyncpa [#allocation6], 0 }
   0x2   :  { %14 = vsyncpa [#allocation4], 0 }
   0x3   :  { %16 = vsyncpa [#allocation4 + $0x1], 0  ;;  %s847_s24 = smov 0   ;;  %s849_s25 = smov 0  }
   0x4   :  { %s851_s26 = smov 0   ;;  %s853_s27 = smov 0  }
   0x5 LB: > { %s868_s28 = sadd.s32 4294967295, %s800_s27   ;;  %s541_s29 = sadd.s32 4294967294, %s800_s27   ;;  %s800_s27 = sphi %s853_s27, %s984_s27   ;;  %s796_s26 = sphi %s851_s26, %s983_s26   ;;  %s792_s25 = sphi %s849_s25, %s982_s25   ;;  %s788_s24 = sphi %s847_s24, %s981_s24  }
   0x6   : > { %s872_s30 = sadd.s32 1, %s800_s27   ;;  %s181_s8 = sadd.s32 1, %s796_s26 }
   0x7   : > { %s178_s9 = ssub.s32 %s800_s27, %s872_s30  ;;  %p191_p0 = scmp.ne.s32.totalorder %s796_s26, %s792_s25 }
   0x8   : > { %p179_p1 = scmp.eq.s32.totalorder %s178_s9, 0  ;;  %p192_p2 = scmp.eq.s32.totalorder %s868_s28, 1 }
   0x9   : > { %p197_p3 = scmp.ne.s32.totalorder %s792_s25, %s788_s24  ;;  %p198_p4 = scmp.eq.s32.totalorder %s541_s29, 1 }
   0xa   : > { %s883_s10 = scalar_select %p179_p1, %s796_s26, %s181_s8  }
   0xb   : > { %p885_p5 = por %p192_p2, %p191_p0  ;;  %p889_p6 = por %p198_p4, %p197_p3 }
   0xc   : > { %p542_p7 = scmp.ge.s32.totalorder %s800_s27, 1  ;;  %p205_p8 = scmp.lt.s32.totalorder %s800_s27, 3 }
   0xd   : > { %p623_p9 = scmp.eq.s32.totalorder %s868_s28, 0  ;;  %s220_s16 = sshll.u32 %s972_s2, 4  ;;  %s221_s16 = int_to_ptr.hbm [resolvable:$true] %s220_s16 }
   0xe   : > { %p896_p10 = pnand %p542_p7, %p205_p8  ;;  %s802_s17 = smov [#allocation2]  }
   0xf   : > { %s222_s18 = sshll.u32 %s802_s17, 4  ;;  %s237_s21 = sshll.u32 %s975_s5, 4  ;;  %s223_s18 = int_to_ptr.vmem [resolvable:$true] %s222_s18  ;;  %s238_s21 = int_to_ptr.hbm [resolvable:$true] %s237_s21 }
  0x10   : > { %p612_p11 = pneg %p896_p10  ;;  %s803_s22 = smov [#allocation5]  }
  0x11   : > { %s239_s23 = sshll.u32 %s803_s22, 4  ;;  %s804_s29 = smov 64   ;;  %s240_s23 = int_to_ptr.vmem [resolvable:$true] %s239_s23 }
  0x12   : > { %p613_p12 = pnand %p623_p9, %p612_p11  ;;  %s805_s8 = smov 4  }
  0x13   : > { %265 = sbr.rel (%p896_p10) target bundleno = 435 (0x1b3), region = 48 }
  0x14   : > { %615 = dma.hbm_to_vmem [thread:$0]  (!%p613_p12), %s221_s16, 64, %s223_s18, [#allocation3]  }
  0x15   : > { %618 = dma.hbm_to_vmem [thread:$0]  (!%p613_p12), %s238_s21, 1024, %s240_s23, [#allocation6], %s804_s29, %s804_s29, %s805_s8  }
  0x18   : > { %775 = dma.done.wait (%p623_p9), [#allocation3], 64  }
  0x19   : > { %777 = vsyncadd (%p623_p9), [#allocation3], 4294967232 }
  0x1a   : > { %779 = dma.done.wait (%p623_p9), [#allocation6], 1024  }
  0x1b   : > { %781 = vsyncadd (%p623_p9), [#allocation6], 4294966272  ;;  %v806_v0 = vmov 0   ;;  %s551_s9 = sshll.u32 %s868_s28, 3  ;;  %v593_v3 = vld [vmem:[%s973_s3] sm:$0xff]  ;;  %v600_v5 = vld [vmem:[#allocation5 + $0x30] sm:$0xff] }
  0x1c   : > { %665 = vset.pattern.permute.xlu0 %v806_v0  ;;  %s308_s15 = scalar_lea.vmem %s971_s1, %s551_s9  ;;  %343 = vmatpush.bf16.msra.mxu0 %v593_v3  ;;  %v601_v4 = vld [vmem:[#allocation5 + $0x38] sm:$0xff]  ;;  %p302_p13 = scmp.lt.s32.totalorder %s868_s28, 1  ;;  %vm332_vm2 = vcmask 130048   ;;  %v599_v10 = vld [vmem:[#allocation5 + $0x28] sm:$0xff]  ;;  %v598_v11 = vld [vmem:[#allocation5 + $0x20] sm:$0xff] }
  0x1d   : > { %v309_v1 = vld [vmem:[%s308_s15] sm:$0xff]  ;;  %427 = vmatpush.bf16.msra.mxu1 %v601_v4  ;;  %v596_v13 = vld [vmem:[#allocation5 + $0x10] sm:$0xff]  ;;  %v595_v14 = vld [vmem:[#allocation5 + $0x8] sm:$0xff]  ;;  %s299_s8 = sand.u32 1, %s792_s25   ;;  %s590_s13 = sshll.u32 %s868_s28, 2 }
  0x1e   : > { %vm310_vm0 = vcmp.gt.f32.partialorder %v309_v1, 0.5  ;;  %s303_s18 = scalar_select %p302_p13, %s868_s28, 1  ;;  %v311_v7 = vld [vmem:[#allocation2] sm:$0xf]  ;;  %v594_v15 = vld [vmem:[#allocation5] sm:$0xff] }
  0x1f   : > { %v313_v2 = vsel %vm310_vm0, 1, %v806_v0  ;;  %v597_v12 = vld [vmem:[#allocation5 + $0x18] sm:$0xff]  ;;  %s549_s9 = sshll.u32 %s299_s8, 2 }
  0x20   : > { %315 = vperm.xlu0 %665, %v313_v2   ;;  %s550_s19 = sshll.u32 %s303_s18, 2  ;;  %v666_v16 = vld [vmem:[%s974_s4] ss:$0 sm:$0xff]  ;;  %s453_s18 = scalar_lea.hbm %s977_s7, %s590_s13 }
  0x21   : > { %428 = vmatpush.bf16.msra.mxu1 %v600_v5  ;;  %s305_s22 = scalar_lea.vmem %s970_s0, %s550_s19  ;;  %v667_v30 = vld [vmem:[%s976_s6] ss:$0 sm:$0xff]  ;;  %s301_s19 = scalar_lea.vmem [#allocation7], %s549_s9 }
  0x22   : > { %v312_v8 = vld [vmem:[%s305_s22] sm:$0xf]  ;;  %s455_s20 = sshll.u32 %s301_s19, 4  ;;  %s457_s21 = sshll.u32 %s453_s18, 4  ;;  %s456_s20 = int_to_ptr.vmem [resolvable:$true] %s455_s20  ;;  %s458_s21 = int_to_ptr.hbm [resolvable:$true] %s457_s21 }
  0x23   : > { %s443_s22 = scalar_lea.sflag [#allocation4], %s299_s8  ;;  %s744_s28 = sshra.s32 %s458_s21, 4  ;;  %s745_s28 = int_to_ptr.hbm [resolvable:$true] %s744_s28 }
  0x24   : > { %s746_s23 = scalar_lea.hbm %s745_s28, 4  ;;  %s750_s13 = scalar_lea.hbm %s977_s7, 8 }
  0x25   : > { %429 = vmatpush.bf16.msra.mxu1 %v599_v10  ;;  %p747_p0 = scmp.ne.s32.totalorder %s745_s28, %s746_s23  ;;  %p751_p3 = scmp.lt.s32.totalorder %s745_s28, %s977_s7 }
  0x26   : > { %p752_p4 = scmp.lt.s32.totalorder %s750_s13, %s746_s23 }
  0x27   : > { %p748_p1 = pnand %p747_p0, %p885_p5 }
  0x28   : > { %p753_p7 = por %p752_p4, %p751_p3 }
  0x29   : > { %430 = vmatpush.bf16.msra.mxu1 %v598_v11  ;;  %p749_p2 = pneg %p748_p1 }
  0x2b   : > { %p754_p8 = pnand %p753_p7, %p749_p2 }
  0x2d   : > { %431 = vmatpush.bf16.msra.mxu1 %v597_v12 }
  0x31   : > { %432 = vmatpush.bf16.msra.mxu1 %v596_v13 }
  0x35   : > { %433 = vmatpush.bf16.msra.mxu1 %v595_v14 }
  0x39   : > { %434 = vmatpush.bf16.msra.mxu1 %v594_v15 }
  0x92   : > { %v316_v6 = vpop.permute.xlu0 %315 }
  0x93   : > { %vm317_vm1 = vcmp.eq.s32.totalorder %v316_v6, 1 }
  0x94   : > { %vm318_vm3 = vmpackc.low %vm317_vm1, %vm317_vm1 }
  0x95   : > { %v319_v9 = vsel %vm318_vm3, %v311_v7, %v312_v8 }
  0x96   : > { %556 = vmatmul.msk.bf16.vlgmr.msra.gmra.mxu0 %vm332_vm2, %v319_v9 }
 0x113   : > { %v345_v17 = vpop.f32.mrf.mxu0 }
 0x114   : > { %v346_v18 = vadd.f32 %v666_v16, %v345_v17 }
 0x116   : > { %v350_v19 = vmul.f32 0.044715, %v346_v18  ;;  %v349_v26 = vmul.f32 0.5, %v346_v18 }
 0x118   : > { %v351_v20 = vmul.f32 %v350_v19, %v346_v18 }
 0x11a   : > { %v352_v21 = vmul.f32 %v351_v20, %v346_v18 }
 0x11b   : > { %v347_v22 = vpop.f32.mrf.mxu0 }
 0x11c   : > { %v353_v23 = vadd.f32 %v352_v21, %v346_v18 }
 0x11e   : > { %v354_v24 = vmul.f32 0.7978846, %v353_v23 }
 0x120   : > { %668 = vtanh.f32 %v354_v24 }
 0x126   : > { %v669_v25 = vpop.eup %668 }
 0x127   : > { %v356_v27 = vadd.f32 1.0, %v669_v25 }
 0x129   : > { %v357_v28 = vmul.f32 %v356_v27, %v349_v26 }
 0x12b   : > { %v358_v29 = vpack.c.bf16 %v357_v28, %v357_v28 }
 0x12d   : > { %435 = vmatmul.bf16.vlgmr.msra.gmra.mxu1 %v358_v29 }
 0x1aa   : > { %v436_v31 = vpop.f32.mrf.mxu1 }
 0x1ab   : > { %v437_v32 = vadd.f32 %v667_v30, %v436_v31 }
 0x1ad   : > { %v440_v33 = vpack.c.bf16 %v437_v32, %v437_v32 }
 0x1af   : > { %441 = vst [vmem:[%s301_s19] sm:$0xf] %v440_v33 }
 0x1b0   : > { %757 = shalt.err (!%p754_p8)
}
 0x1b1   : > { %610 = dma.vmem_to_hbm [thread:$0]  (%p885_p5), %s456_s20, 64, %s458_s21, %s443_s22  }
 0x1b2   : > { %v438_v34 = vpop.f32.mrf.mxu1 }
 0x1b3 PF: > { %p627_p9 = scmp.ge.s32.totalorder %s800_s27, 2  ;;  %s469_s8 = sand.u32 1, %s788_s24  }
 0x1b4   : > { %s470_s16 = scalar_lea.sflag [#allocation4], %s469_s8 }
 0x1b5   : > { %p620_p10 = pnand %p627_p9, %p889_p6 }
 0x1b7   : > { %p621_p11 = pneg %p620_p10 }
 0x1b9   : > { %783 = dma.done.wait (%p621_p11), %s470_s16, 64  }
 0x1ba   : > { %785 = vsyncadd (%p621_p11), %s470_s16, 4294967232  ;;  %p19_p12 = scmp.ge.s32.totalorder %s872_s30, 4   ;;  %s981_s24 = smov %s792_s25 }
 0x1bb   : > { %s982_s25 = smov %s796_s26  ;;  %s983_s26 = smov %s883_s10 }
 0x1bc   : > { %s984_s27 = smov %s872_s30  ;;  %21 = sbr.rel (!%p19_p12) target bundleno = 5 (0x5), region = 93 }
 0x1c1   :  { %476 = vsyncpa [#allocation3], 1 }
 0x1c2   :  { %478 = vsyncpa [#allocation3 + $0x1], 1 }
 0x1c3   :  { %479 = vsyncpa [#allocation6], 1 }
 0x1c4   :  { %480 = vsyncpa [#allocation4], 1 }
 0x1c5   :  { %482 = vsyncpa [#allocation4 + $0x1], 1 }

</bundles_post_ra>
